<compile_context>
chip_gen: v7x
topology: tpu7x:2x2x1
jax: 0.10.0
libtpu: 0.0.40
codegen_flags: <defaults>
</compile_context>

<pallas_src>
import jax
import jax.numpy as jnp
from jax.experimental import pallas as pl
from jax.experimental.pallas import tpu as pltpu


def _make_lambda_kernel(func):
    """Pallas kernel body: apply `func` elementwise to the current tile."""
    def kernel(x_ref, o_ref):
        o_ref[...] = func(x_ref[...])
    return kernel


def _sublane_pack(dtype):
    """Packed sublane multiple: 8 for 4-byte, 16 for 2-byte, 32 for 1-byte."""
    itemsize = jnp.dtype(dtype).itemsize
    return max(8, 32 // max(1, itemsize))


def _chip_tuning():
    """(target_block_bytes, vmem_limit_bytes-or-None) per TPU generation."""
    try:
        kind = jax.devices()[0].device_kind.lower()
    except Exception:
        kind = ""
    if "v7" in kind:
        # 3.2 TB/s HBM: 6 MiB blocks keep the fixed per-step cost < 10%.
        # (in + out) x 2 double-buffers x 6 MiB = 24 MiB; raise scoped VMEM
        # explicitly (64 MiB physical, 32 MiB scoped default on v7x).
        return 6 * 1024 * 1024, 48 << 20
    if "v6" in kind:
        # 4 MiB blocks -> 16 MiB double-buffered, under the 32 MiB default.
        return 4 * 1024 * 1024, None
    # v5e / CPU-interpret / unknown: 2 MiB blocks -> 8 MiB double-buffered,
    # well inside the 16 MiB scoped default; bigger buys nothing at 0.8 TB/s.
    return 2 * 1024 * 1024, None


def _pick_lane_width(total, pack, max_lane=1024):
    """Largest lane (multiple of 128, dividing total, <= max_lane); prefer one
    whose row count (total // lane) is a multiple of the sublane pack so the
    final sublane block is unmasked. Returns 0 if no 128-multiple divides."""
    top = min(max_lane, total)
    top -= top % 128
    best = 0
    for cand in range(top, 127, -128):
        if total % cand:
            continue
        if best == 0:
            best = cand
        if (total // cand) % pack == 0:
            return cand
    return best


def lambda_forward(x, func, *, target_block_bytes=None, vmem_limit_bytes=None,
                   donate_input=False):
    """Pallas equivalent of Lambda(func).forward(x) for elementwise `func`.

    NOTE: this flattens x to a lane-dense 2-D slab, so `func` must be purely
    elementwise (no reductions / axis-dependent semantics).
    """
    orig_shape = x.shape
    dtype = x.dtype
    total = x.size
    itemsize = jnp.dtype(dtype).itemsize
    pack = _sublane_pack(dtype)

    if target_block_bytes is None:
        target_block_bytes, auto_limit = _chip_tuning()
        if vmem_limit_bytes is None:
            vmem_limit_bytes = auto_limit

    lane = _pick_lane_width(total, pack)
    trailing = 0
    if lane == 0:
        # Rare odd-size fallback: pad to a multiple of 128 lanes.
        # TODO(synk): handle the ragged tail in-kernel (masked pltpu.store on
        # the last grid step, true length via SMEM scalar) so non-128-divisible
        # sizes also stay a single HBM pass.
        lane = 128
        padded = pl.cdiv(total, lane) * lane
        trailing = padded - total
        x_flat = jnp.concatenate(
            [jnp.ravel(x), jnp.zeros((trailing,), dtype=dtype)])
    else:
        x_flat = jnp.ravel(x)  # metadata-only: lane divides total exactly

    rows = x_flat.size // lane
    x2d = x_flat.reshape(rows, lane)

    # Row tile: ~target_block_bytes per block, rounded to the dtype's packed
    # sublane multiple (8 f32 / 16 bf16 / 32 int8); full row extent for small
    # arrays (full-extent blocks are always legal).
    row_tile = target_block_bytes // (lane * itemsize)
    row_tile = max(pack, (row_tile // pack) * pack)
    if row_tile >= rows:
        row_tile = rows
        # Keep >= 2 grid steps when possible so both v7x TensorCores get work
        # under dimension_semantics=("parallel",).
        if rows >= 2 * pack:
            half = (rows + 1) // 2
            row_tile = ((half + pack - 1) // pack) * pack

    grid = (pl.cdiv(rows, row_tile),)

    cost = pl.CostEstimate(
        flops=total,                      # ~1 mul per element (e.g. SiLU)
        transcendentals=total,            # ~1 EUP op per element (sigmoid)
        bytes_accessed=2 * total * itemsize)

    out2d = pl.pallas_call(
        _make_lambda_kernel(func),
        out_shape=jax.ShapeDtypeStruct((rows, lane), dtype),
        grid=grid,
        in_specs=[pl.BlockSpec((row_tile, lane), lambda i: (i, 0))],
        out_specs=pl.BlockSpec((row_tile, lane), lambda i: (i, 0)),
        # Elementwise in-place reuse of the input HBM buffer (only safe if the
        # caller no longer needs x); off by default.
        input_output_aliases=({0: 0} if donate_input else {}),
        compiler_params=pltpu.CompilerParams(
            dimension_semantics=("parallel",),
            vmem_limit_bytes=vmem_limit_bytes),
        cost_estimate=cost,
    )(x2d)

    out_flat = out2d.reshape(-1)
    if trailing:
        out_flat = out_flat[:total]
    return out_flat.reshape(orig_shape)


if __name__ == "__main__":
    # Concrete func the Lambda module is instantiated with (elementwise SiLU).
    func = lambda t: t * jax.nn.sigmoid(t)

    key = jax.random.PRNGKey(0)
    # NCHW input, small shapes: batch=2, channels=4, spatial=16x16.
    x = jax.random.normal(key, (2, 4, 16, 16), dtype=jnp.float32)

    out = jax.block_until_ready(lambda_forward(x, func))

    # Sanity check against the plain-JAX reference of Lambda(func)(x).
    ref = func(x)
    assert out.shape == x.shape and out.dtype == x.dtype
    assert jnp.allclose(out, ref, atol=1e-6, rtol=1e-6)

    print("KERNEL_OK")
</pallas_src>

<mosaic_0001>
module attributes {stable_mosaic.version = 11 : i64} {
  func.func @kernel(%arg0: i32, %arg1: memref<8x256xf32, #tpu.memory_space<vmem>>, %arg2: memref<8x256xf32, #tpu.memory_space<vmem>>) attributes {dimension_semantics = [#tpu.dimension_semantics<parallel>], iteration_bounds = array<i64: 1>, scalar_prefetch = 0 : i64, scratch_operands = 0 : i64, tpu.core_type = #tpu.core_type<tc>, window_params = [{transform_indices = @transform_0, window_bounds = array<i64: 8, 256>}, {transform_indices = @transform_1, window_bounds = array<i64: 8, 256>}]} {
    %c0 = arith.constant 0 : index
    %c0_0 = arith.constant 0 : index
    %0 = vector.load %arg1[%c0, %c0_0] : memref<8x256xf32, #tpu.memory_space<vmem>>, vector<8x256xf32>
    %1 = arith.negf %0 : vector<8x256xf32>
    %2 = math.exp %1 : vector<8x256xf32>
    %cst = arith.constant 1.000000e+00 : f32
    %3 = vector.broadcast %cst : f32 to vector<8x256xf32>
    %4 = arith.addf %3, %2 : vector<8x256xf32>
    %5 = arith.divf %3, %4 : vector<8x256xf32>
    %6 = arith.mulf %0, %5 : vector<8x256xf32>
    %c0_1 = arith.constant 0 : index
    %c0_2 = arith.constant 0 : index
    %7 = vector.load %arg2[%c0_1, %c0_2] : memref<8x256xf32, #tpu.memory_space<vmem>>, vector<8x256xf32>
    tpu.vector_store %arg2[%c0_1, %c0_2], %6 {strides = array<i32>} : memref<8x256xf32, #tpu.memory_space<vmem>>, vector<8x256xf32>,
    return
  }
  func.func @transform_0(%arg0: i32) -> (i32, i32) {
    %c0_i32 = arith.constant 0 : i32
    %c0_i32_0 = arith.constant 0 : i32
    return %arg0, %c0_i32 : i32, i32
  }
  func.func @transform_1(%arg0: i32) -> (i32, i32) {
    %c0_i32 = arith.constant 0 : i32
    %c0_i32_0 = arith.constant 0 : i32
    return %arg0, %c0_i32 : i32, i32
  }
}

</mosaic_0001>

<bundles_post_ra>
// kernel: tpu_custom_call.1
= control target key start
LH: loop header
LB: loop body
LE: loop exit
PB: predicated region body
PF: predicated region fallthrough
CT: control target
= control target key end

     0   :  { %6 = vsyncpa [#allocation3], 0  ;;  %s150_s0 = inlined_call_operand.hbm [shape: f32[8,256], index: 0, kind: input, shape index: {}]   ;;  %s151_s1 = inlined_call_operand.hbm [shape: f32[8,256], index: 1, kind: output, shape index: {}]  }
   0x1   :  { %7 = vsyncpa [#allocation4], 0  ;;  %s114_s6 = smov [#allocation2]   ;;  %s66_s10 = scalar_lea.hbm %s150_s0, 256 }
   0x2   :  { %s14_s7 = sshll.u32 %s114_s6, 4  ;;  %p67_p0 = scmp.ne.s32.totalorder %s150_s0, %s66_s10  ;;  %s15_s7 = int_to_ptr.vmem [resolvable:$true] %s14_s7 }
   0x3   :  { %p70_p1 = scmp.lt.u32.totalorder %s66_s10, %s150_s0 }
   0x5   :  { %p72_p2 = pnand %p70_p1, %p67_p0 }
   0x7   :  { %75 = shalt.err (!%p72_p2)
}
   0x8   :  { %s76_s15 = scalar_lea.vmem %s15_s7, 256  ;;  %p81_p4 = scmp.lt.s32.totalorder %s15_s7, %s15_s7 }
   0x9   :  { %p77_p3 = scmp.ne.s32.totalorder %s15_s7, %s76_s15  ;;  %p82_p5 = scmp.lt.s32.totalorder %s76_s15, %s76_s15 }
   0xb   :  { %p83_p6 = por %p82_p5, %p81_p4 }
   0xd   :  { %p84_p7 = pnand %p83_p6, %p77_p3 }
   0xf   :  { %87 = shalt.err (!%p84_p7)
}
  0x10   :  { %17 = dma.hbm_to_vmem [thread:$0]  %s150_s0, 256, %s15_s7, [#allocation3]  }
  0x11   :  { %110 = dma.done.wait [#allocation3], 256  }
  0x12   :  { %111 = vsyncadd [#allocation3], 4294967040  ;;  %v21_v0 = vld [vmem:[#allocation2] sm:$0xff]  ;;  %v22_v1 = vld [vmem:[#allocation2 + $0x8] sm:$0xff]  ;;  %s115_s18 = smov [#allocation5]  }
  0x13   :  { %v54_v2 = vmul.f32 -1.442695, %v21_v0  ;;  %v55_v3 = vmul.f32 -1.442695, %v22_v1  ;;  %s45_s19 = sshll.u32 %s115_s18, 4  ;;  %s46_s19 = int_to_ptr.vmem [resolvable:$true] %s45_s19 }
  0x14   :  { %s88_s0 = scalar_lea.vmem %s46_s19, 256  ;;  %p93_p9 = scmp.lt.s32.totalorder %s46_s19, %s46_s19 }
  0x15   :  { %58 = vpow2.f32 %v54_v2  ;;  %p89_p8 = scmp.ne.s32.totalorder %s46_s19, %s88_s0  ;;  %p94_p10 = scmp.lt.s32.totalorder %s88_s0, %s88_s0 }
  0x16   :  { %60 = vpow2.f32 %v55_v3 }
  0x17   :  { %p95_p11 = por %p94_p10, %p93_p9 }
  0x19   :  { %p96_p12 = pnand %p95_p11, %p89_p8 }
  0x1f   :  { %v59_v4 = vpop.eup %58 }
  0x20   :  { %v61_v5 = vpop.eup %60  ;;  %v29_v6 = vadd.f32 1.0, %v59_v4 }
  0x21   :  { %v30_v7 = vadd.f32 1.0, %v61_v5 }
  0x22   :  { %62 = vrcp.f32 %v29_v6 }
  0x23   :  { %64 = vrcp.f32 %v30_v7 }
  0x2c   :  { %v63_v8 = vpop.eup %62 }
  0x2d   :  { %v65_v9 = vpop.eup %64  ;;  %v35_v10 = vmul.f32 %v63_v8, %v21_v0 }
  0x2e   :  { %v36_v11 = vmul.f32 %v65_v9, %v22_v1 }
  0x2f   :  { %37 = vst [vmem:[#allocation5] sm:$0xff] %v35_v10 }
  0x30   :  { %38 = vst [vmem:[#allocation5 + $0x8] sm:$0xff] %v36_v11 }
  0x31   :  { %99 = shalt.err (!%p96_p12)
}
  0x32   :  { %s100_s22 = scalar_lea.hbm %s151_s1, 256 }
  0x33   :  { %p101_p13 = scmp.ne.s32.totalorder %s151_s1, %s100_s22  ;;  %p104_p0 = scmp.lt.u32.totalorder %s100_s22, %s151_s1 }
  0x35   :  { %p106_p1 = pnand %p104_p0, %p101_p13 }
  0x37   :  { %109 = shalt.err (!%p106_p1)
}
  0x38   :  { %48 = dma.vmem_to_hbm [thread:$0]  %s46_s19, 256, %s151_s1, [#allocation4]  }
  0x39   :  { %112 = dma.done.wait [#allocation4], 256  }
  0x3a   :  { %113 = vsyncadd [#allocation4], 4294967040 }
  0x3b   :  { %52 = vsyncpa [#allocation3], 1 }
  0x3c   :  { %53 = vsyncpa [#allocation4], 1 }

</bundles_post_ra>
